<compile_context>
chip_gen: v5e
topology: v5e:2x2
jax: 0.10.0
libtpu: 0.0.40
codegen_flags: <defaults>
</compile_context>

<pallas_src>
import math

import jax
import jax.numpy as jnp
from jax.experimental import pallas as pl
from jax.experimental.pallas import tpu as pltpu

H1, H2, OUT = 1000, 100, 20     # logical layer widths (PyTorch module)
LANE = 128
H1_CHUNK = 256                  # fc1 output processed in 1024/256 = 4 chunks
MAX_TB = 512                    # max batch rows per grid step


def _round_up(n, m):
    return ((n + m - 1) // m) * m


H1_PAD = _round_up(H1, LANE)    # 1024
H2_PAD = _round_up(H2, LANE)    # 128
OUT_PAD = _round_up(OUT, LANE)  # 128


def _mlp_kernel(x_ref, w1_ref, b1_ref, w2_ref, b2_ref, w3_ref, b3_ref, o_ref):
    # Matmul inputs in bf16 (MXU-native); accumulation + bias/ReLU in f32.
    x = x_ref[...]
    if x.dtype != jnp.bfloat16:
        x = x.astype(jnp.bfloat16)
    tb = x.shape[0]

    # fc1 + ReLU + fc2 contraction, chunked along the 1024-wide hidden dim so
    # the full f32 h1 slab is never materialized in VMEM.
    acc = jnp.zeros((tb, H2_PAD), jnp.float32)
    for c in range(H1_PAD // H1_CHUNK):          # 4 static chunks
        lo = c * H1_CHUNK
        hi = lo + H1_CHUNK
        h1c = jnp.dot(x, w1_ref[:, lo:hi], preferred_element_type=jnp.float32)
        h1c = jnp.maximum(h1c + b1_ref[:, lo:hi], 0.0)
        acc = acc + jnp.dot(h1c.astype(jnp.bfloat16), w2_ref[lo:hi, :],
                            preferred_element_type=jnp.float32)

    h2 = jnp.maximum(acc + b2_ref[...], 0.0)
    o = jnp.dot(h2.astype(jnp.bfloat16), w3_ref[...],
                preferred_element_type=jnp.float32) + b3_ref[...]
    o_ref[...] = o.astype(o_ref.dtype)


def _pick_batch_tile(B):
    """Pick (TB, B_pad): sublane-aligned tile, <=512 rows/step, and >=2 grid
    steps whenever the padded batch is >=16 rows (so v7x megacore can split
    the batch across its two TensorCores)."""
    b8 = _round_up(B, 8)
    n_steps = max(pl.cdiv(b8, MAX_TB), 2 if b8 >= 16 else 1)
    tb = _round_up(pl.cdiv(b8, n_steps), 8)
    n_steps = pl.cdiv(b8, tb)
    return tb, tb * n_steps


def mlp_forward(x, kernel_params):
    """Fused 3-layer MLP. `x` is (B, num_shape) f32 or bf16; params from
    prepare_kernel_params."""
    w1, b1, w2, b2, w3, b3 = kernel_params
    B, D = x.shape

    TB, B_pad = _pick_batch_tile(B)
    if B_pad != B:
        x = jnp.pad(x, ((0, B_pad - B), (0, 0)))
    grid = (B_pad // TB,)

    batch_spec = lambda cols: pl.BlockSpec((TB, cols), lambda i: (i, 0))
    const_spec = lambda shape: pl.BlockSpec(shape, lambda i: (0, 0))

    itemsize = jnp.dtype(x.dtype).itemsize
    flops = 2 * B_pad * (D * H1_PAD + H1_PAD * H2_PAD + H2_PAD * OUT_PAD)
    bytes_accessed = (
        B_pad * D * itemsize
        + sum(int(p.size) * jnp.dtype(p.dtype).itemsize for p in kernel_params)
        + B_pad * OUT_PAD * 4)
    cost = pl.CostEstimate(flops=int(flops), transcendentals=0,
                           bytes_accessed=int(bytes_accessed))

    out = pl.pallas_call(
        _mlp_kernel,
        out_shape=jax.ShapeDtypeStruct((B_pad, OUT_PAD), jnp.float32),
        grid=grid,
        in_specs=[
            batch_spec(D),
            const_spec(w1.shape), const_spec(b1.shape),
            const_spec(w2.shape), const_spec(b2.shape),
            const_spec(w3.shape), const_spec(b3.shape),
        ],
        out_specs=batch_spec(OUT_PAD),
        compiler_params=pltpu.CompilerParams(
            dimension_semantics=("parallel",)),
        cost_estimate=cost,
    )(x, w1, b1, w2, b2, w3, b3)

    # Padded rows/columns sliced off outside the kernel (lane-dense store
    # inside). For very large batches a consumer may prefer the padded slab.
    return out[:B, :OUT]


def init_linear_params(key, in_features, out_features):
    """Matches PyTorch nn.Linear default init (U[-k, k], k = 1/sqrt(in))."""
    kw, kb = jax.random.split(key)
    bound = 1.0 / math.sqrt(in_features)
    # Stored as (in, out): transpose of torch's (out, in) weight layout.
    w = jax.random.uniform(kw, (in_features, out_features), jnp.float32, -bound, bound)
    b = jax.random.uniform(kb, (1, out_features), jnp.float32, -bound, bound)
    return w, b


def init_net_params(key, num_shape):
    k1, k2, k3 = jax.random.split(key, 3)
    w1, b1 = init_linear_params(k1, num_shape, H1)
    w2, b2 = init_linear_params(k2, H1, H2)
    w3, b3 = init_linear_params(k3, H2, OUT)
    return (w1, b1, w2, b2, w3, b3)


def _pad2(a, rows, cols):
    return jnp.pad(a, ((0, rows - a.shape[0]), (0, cols - a.shape[1])))


def prepare_kernel_params(params):
    """Zero-pad to lane-dense shapes; weights in bf16, biases stay f32."""
    w1, b1, w2, b2, w3, b3 = params
    d_in = w1.shape[0]
    return (
        _pad2(w1, d_in, H1_PAD).astype(jnp.bfloat16), _pad2(b1, 1, H1_PAD),
        _pad2(w2, H1_PAD, H2_PAD).astype(jnp.bfloat16), _pad2(b2, 1, H2_PAD),
        _pad2(w3, H2_PAD, OUT_PAD).astype(jnp.bfloat16), _pad2(b3, 1, OUT_PAD),
    )


def reference_forward(x, params):
    """Pure-JAX f32 reference (unpadded params) for correctness checking."""
    w1, b1, w2, b2, w3, b3 = params
    h1 = jnp.maximum(x @ w1 + b1, 0.0)
    h2 = jnp.maximum(h1 @ w2 + b2, 0.0)
    return h2 @ w3 + b3


if __name__ == "__main__":
    key = jax.random.PRNGKey(0)
    k_params, k_x = jax.random.split(key)

    num_shape = 32   # input feature dim (nn.Linear(num_shape, 1000))
    batch = 8

    params = init_net_params(k_params, num_shape)
    kernel_params = prepare_kernel_params(params)
    x = jax.random.normal(k_x, (batch, num_shape), dtype=jnp.float32)

    out = jax.block_until_ready(mlp_forward(x, kernel_params))
    ref = reference_forward(x, params)

    assert out.shape == (batch, OUT), out.shape
    max_err = float(jnp.max(jnp.abs(out - ref)))
    # bf16 matmul inputs vs. f32 reference: allow a small tolerance.
    assert max_err < 5e-2, f"max abs err {max_err} vs f32 reference"

    # Also exercise a batch that takes the multi-step grid path (>=2 steps).
    x2 = jax.random.normal(jax.random.PRNGKey(1), (40, num_shape), jnp.float32)
    out2 = jax.block_until_ready(mlp_forward(x2, kernel_params))
    ref2 = reference_forward(x2, params)
    assert out2.shape == (40, OUT)
    assert float(jnp.max(jnp.abs(out2 - ref2))) < 5e-2

    print("KERNEL_OK")
</pallas_src>

<mosaic_0001>
module attributes {stable_mosaic.version = 11 : i64} {
  func.func @_mlp_kernel(%arg0: i32, %arg1: memref<8x32xf32, #tpu.memory_space<vmem>>, %arg2: memref<32x1024xbf16, #tpu.memory_space<vmem>>, %arg3: memref<1x1024xf32, #tpu.memory_space<vmem>>, %arg4: memref<1024x128xbf16, #tpu.memory_space<vmem>>, %arg5: memref<1x128xf32, #tpu.memory_space<vmem>>, %arg6: memref<128x128xbf16, #tpu.memory_space<vmem>>, %arg7: memref<1x128xf32, #tpu.memory_space<vmem>>, %arg8: memref<8x128xf32, #tpu.memory_space<vmem>>) attributes {dimension_semantics = [#tpu.dimension_semantics<parallel>], iteration_bounds = array<i64: 1>, scalar_prefetch = 0 : i64, scratch_operands = 0 : i64, tpu.core_type = #tpu.core_type<tc>, window_params = [{transform_indices = @transform_0, window_bounds = array<i64: 8, 32>}, {pipeline_mode = #tpu.pipeline_mode<synchronous>, transform_indices = @transform_1, window_bounds = array<i64: 32, 1024>}, {pipeline_mode = #tpu.pipeline_mode<synchronous>, transform_indices = @transform_2, window_bounds = array<i64: 1, 1024>}, {pipeline_mode = #tpu.pipeline_mode<synchronous>, transform_indices = @transform_3, window_bounds = array<i64: 1024, 128>}, {pipeline_mode = #tpu.pipeline_mode<synchronous>, transform_indices = @transform_4, window_bounds = array<i64: 1, 128>}, {pipeline_mode = #tpu.pipeline_mode<synchronous>, transform_indices = @transform_5, window_bounds = array<i64: 128, 128>}, {pipeline_mode = #tpu.pipeline_mode<synchronous>, transform_indices = @transform_6, window_bounds = array<i64: 1, 128>}, {transform_indices = @transform_7, window_bounds = array<i64: 8, 128>}]} {
    %c0 = arith.constant 0 : index
    %c0_0 = arith.constant 0 : index
    %0 = vector.load %arg1[%c0, %c0_0] : memref<8x32xf32, #tpu.memory_space<vmem>>, vector<8x32xf32>
    %1 = arith.truncf %0 : vector<8x32xf32> to vector<8x32xbf16>
    %cst = arith.constant 0.000000e+00 : f32
    %2 = vector.broadcast %cst : f32 to vector<8x128xf32>
    %c0_1 = arith.constant 0 : index
    %c0_2 = arith.constant 0 : index
    %3 = vector.load %arg2[%c0_1, %c0_2] : memref<32x1024xbf16, #tpu.memory_space<vmem>>, vector<32x256xbf16>
    %cst_3 = arith.constant dense<0.000000e+00> : vector<8x256xf32>
    %4 = tpu.matmul %1, %3, %cst_3 {dimension_numbers = #tpu.dot_dimension_numbers<[1], [0], [0], [1], [0, 0, 1, 1], [], []>} : vector<8x32xbf16>, vector<32x256xbf16>, vector<8x256xf32> -> vector<8x256xf32>
    %c0_4 = arith.constant 0 : index
    %c0_5 = arith.constant 0 : index
    %5 = vector.load %arg3[%c0_4, %c0_5] : memref<1x1024xf32, #tpu.memory_space<vmem>>, vector<1x256xf32>
    %6 = vector.broadcast %5 : vector<1x256xf32> to vector<8x256xf32>
    %7 = arith.addf %4, %6 : vector<8x256xf32>
    %cst_6 = arith.constant 0.000000e+00 : f32
    %8 = vector.broadcast %cst_6 : f32 to vector<8x256xf32>
    %9 = arith.maximumf %7, %8 : vector<8x256xf32>
    %10 = arith.truncf %9 : vector<8x256xf32> to vector<8x256xbf16>
    %c0_7 = arith.constant 0 : index
    %c0_8 = arith.constant 0 : index
    %11 = vector.load %arg4[%c0_7, %c0_8] : memref<1024x128xbf16, #tpu.memory_space<vmem>>, vector<256x128xbf16>
    %cst_9 = arith.constant dense<0.000000e+00> : vector<8x128xf32>
    %12 = tpu.matmul %10, %11, %cst_9 {dimension_numbers = #tpu.dot_dimension_numbers<[1], [0], [0], [1], [0, 0, 1, 1], [], []>} : vector<8x256xbf16>, vector<256x128xbf16>, vector<8x128xf32> -> vector<8x128xf32>
    %13 = arith.addf %2, %12 : vector<8x128xf32>
    %c0_10 = arith.constant 0 : index
    %c256 = arith.constant 256 : index
    %14 = vector.load %arg2[%c0_10, %c256] : memref<32x1024xbf16, #tpu.memory_space<vmem>>, vector<32x256xbf16>
    %cst_11 = arith.constant dense<0.000000e+00> : vector<8x256xf32>
    %15 = tpu.matmul %1, %14, %cst_11 {dimension_numbers = #tpu.dot_dimension_numbers<[1], [0], [0], [1], [0, 0, 1, 1], [], []>} : vector<8x32xbf16>, vector<32x256xbf16>, vector<8x256xf32> -> vector<8x256xf32>
    %c0_12 = arith.constant 0 : index
    %c256_13 = arith.constant 256 : index
    %16 = vector.load %arg3[%c0_12, %c256_13] : memref<1x1024xf32, #tpu.memory_space<vmem>>, vector<1x256xf32>
    %17 = vector.broadcast %16 : vector<1x256xf32> to vector<8x256xf32>
    %18 = arith.addf %15, %17 : vector<8x256xf32>
    %cst_14 = arith.constant 0.000000e+00 : f32
    %19 = vector.broadcast %cst_14 : f32 to vector<8x256xf32>
    %20 = arith.maximumf %18, %19 : vector<8x256xf32>
    %21 = arith.truncf %20 : vector<8x256xf32> to vector<8x256xbf16>
    %c256_15 = arith.constant 256 : index
    %c0_16 = arith.constant 0 : index
    %22 = vector.load %arg4[%c256_15, %c0_16] : memref<1024x128xbf16, #tpu.memory_space<vmem>>, vector<256x128xbf16>
    %cst_17 = arith.constant dense<0.000000e+00> : vector<8x128xf32>
    %23 = tpu.matmul %21, %22, %cst_17 {dimension_numbers = #tpu.dot_dimension_numbers<[1], [0], [0], [1], [0, 0, 1, 1], [], []>} : vector<8x256xbf16>, vector<256x128xbf16>, vector<8x128xf32> -> vector<8x128xf32>
    %24 = arith.addf %13, %23 : vector<8x128xf32>
    %c0_18 = arith.constant 0 : index
    %c512 = arith.constant 512 : index
    %25 = vector.load %arg2[%c0_18, %c512] : memref<32x1024xbf16, #tpu.memory_space<vmem>>, vector<32x256xbf16>
    %cst_19 = arith.constant dense<0.000000e+00> : vector<8x256xf32>
    %26 = tpu.matmul %1, %25, %cst_19 {dimension_numbers = #tpu.dot_dimension_numbers<[1], [0], [0], [1], [0, 0, 1, 1], [], []>} : vector<8x32xbf16>, vector<32x256xbf16>, vector<8x256xf32> -> vector<8x256xf32>
    %c0_20 = arith.constant 0 : index
    %c512_21 = arith.constant 512 : index
    %27 = vector.load %arg3[%c0_20, %c512_21] : memref<1x1024xf32, #tpu.memory_space<vmem>>, vector<1x256xf32>
    %28 = vector.broadcast %27 : vector<1x256xf32> to vector<8x256xf32>
    %29 = arith.addf %26, %28 : vector<8x256xf32>
    %cst_22 = arith.constant 0.000000e+00 : f32
    %30 = vector.broadcast %cst_22 : f32 to vector<8x256xf32>
    %31 = arith.maximumf %29, %30 : vector<8x256xf32>
    %32 = arith.truncf %31 : vector<8x256xf32> to vector<8x256xbf16>
    %c512_23 = arith.constant 512 : index
    %c0_24 = arith.constant 0 : index
    %33 = vector.load %arg4[%c512_23, %c0_24] : memref<1024x128xbf16, #tpu.memory_space<vmem>>, vector<256x128xbf16>
    %cst_25 = arith.constant dense<0.000000e+00> : vector<8x128xf32>
    %34 = tpu.matmul %32, %33, %cst_25 {dimension_numbers = #tpu.dot_dimension_numbers<[1], [0], [0], [1], [0, 0, 1, 1], [], []>} : vector<8x256xbf16>, vector<256x128xbf16>, vector<8x128xf32> -> vector<8x128xf32>
    %35 = arith.addf %24, %34 : vector<8x128xf32>
    %c0_26 = arith.constant 0 : index
    %c768 = arith.constant 768 : index
    %36 = vector.load %arg2[%c0_26, %c768] : memref<32x1024xbf16, #tpu.memory_space<vmem>>, vector<32x256xbf16>
    %cst_27 = arith.constant dense<0.000000e+00> : vector<8x256xf32>
    %37 = tpu.matmul %1, %36, %cst_27 {dimension_numbers = #tpu.dot_dimension_numbers<[1], [0], [0], [1], [0, 0, 1, 1], [], []>} : vector<8x32xbf16>, vector<32x256xbf16>, vector<8x256xf32> -> vector<8x256xf32>
    %c0_28 = arith.constant 0 : index
    %c768_29 = arith.constant 768 : index
    %38 = vector.load %arg3[%c0_28, %c768_29] : memref<1x1024xf32, #tpu.memory_space<vmem>>, vector<1x256xf32>
    %39 = vector.broadcast %38 : vector<1x256xf32> to vector<8x256xf32>
    %40 = arith.addf %37, %39 : vector<8x256xf32>
    %cst_30 = arith.constant 0.000000e+00 : f32
    %41 = vector.broadcast %cst_30 : f32 to vector<8x256xf32>
    %42 = arith.maximumf %40, %41 : vector<8x256xf32>
    %43 = arith.truncf %42 : vector<8x256xf32> to vector<8x256xbf16>
    %c768_31 = arith.constant 768 : index
    %c0_32 = arith.constant 0 : index
    %44 = vector.load %arg4[%c768_31, %c0_32] : memref<1024x128xbf16, #tpu.memory_space<vmem>>, vector<256x128xbf16>
    %cst_33 = arith.constant dense<0.000000e+00> : vector<8x128xf32>
    %45 = tpu.matmul %43, %44, %cst_33 {dimension_numbers = #tpu.dot_dimension_numbers<[1], [0], [0], [1], [0, 0, 1, 1], [], []>} : vector<8x256xbf16>, vector<256x128xbf16>, vector<8x128xf32> -> vector<8x128xf32>
    %46 = arith.addf %35, %45 : vector<8x128xf32>
    %c0_34 = arith.constant 0 : index
    %c0_35 = arith.constant 0 : index
    %47 = vector.load %arg5[%c0_34, %c0_35] : memref<1x128xf32, #tpu.memory_space<vmem>>, vector<1x128xf32>
    %48 = vector.broadcast %47 : vector<1x128xf32> to vector<8x128xf32>
    %49 = arith.addf %46, %48 : vector<8x128xf32>
    %cst_36 = arith.constant 0.000000e+00 : f32
    %50 = vector.broadcast %cst_36 : f32 to vector<8x128xf32>
    %51 = arith.maximumf %49, %50 : vector<8x128xf32>
    %52 = arith.truncf %51 : vector<8x128xf32> to vector<8x128xbf16>
    %c0_37 = arith.constant 0 : index
    %c0_38 = arith.constant 0 : index
    %53 = vector.load %arg6[%c0_37, %c0_38] : memref<128x128xbf16, #tpu.memory_space<vmem>>, vector<128x128xbf16>
    %cst_39 = arith.constant dense<0.000000e+00> : vector<8x128xf32>
    %54 = tpu.matmul %52, %53, %cst_39 {dimension_numbers = #tpu.dot_dimension_numbers<[1], [0], [0], [1], [0, 0, 1, 1], [], []>} : vector<8x128xbf16>, vector<128x128xbf16>, vector<8x128xf32> -> vector<8x128xf32>
    %c0_40 = arith.constant 0 : index
    %c0_41 = arith.constant 0 : index
    %55 = vector.load %arg7[%c0_40, %c0_41] : memref<1x128xf32, #tpu.memory_space<vmem>>, vector<1x128xf32>
    %56 = vector.broadcast %55 : vector<1x128xf32> to vector<8x128xf32>
    %57 = arith.addf %54, %56 : vector<8x128xf32>
    %c0_42 = arith.constant 0 : index
    %c0_43 = arith.constant 0 : index
    %58 = vector.load %arg8[%c0_42, %c0_43] : memref<8x128xf32, #tpu.memory_space<vmem>>, vector<8x128xf32>
    tpu.vector_store %arg8[%c0_42, %c0_43], %57 {strides = array<i32>} : memref<8x128xf32, #tpu.memory_space<vmem>>, vector<8x128xf32>,
    return
  }
  func.func @transform_0(%arg0: i32) -> (i32, i32) {
    %c0_i32 = arith.constant 0 : i32
    %c0_i32_0 = arith.constant 0 : i32
    return %arg0, %c0_i32 : i32, i32
  }
  func.func @transform_1(%arg0: i32) -> (i32, i32) {
    %c0_i32 = arith.constant 0 : i32
    %c0_i32_0 = arith.constant 0 : i32
    %c0_i32_1 = arith.constant 0 : i32
    return %c0_i32, %c0_i32_0 : i32, i32
  }
  func.func @transform_2(%arg0: i32) -> (i32, i32) {
    %c0_i32 = arith.constant 0 : i32
    %c0_i32_0 = arith.constant 0 : i32
    %c0_i32_1 = arith.constant 0 : i32
    return %c0_i32, %c0_i32_0 : i32, i32
  }
  func.func @transform_3(%arg0: i32) -> (i32, i32) {
    %c0_i32 = arith.constant 0 : i32
    %c0_i32_0 = arith.constant 0 : i32
    %c0_i32_1 = arith.constant 0 : i32
    return %c0_i32, %c0_i32_0 : i32, i32
  }
  func.func @transform_4(%arg0: i32) -> (i32, i32) {
    %c0_i32 = arith.constant 0 : i32
    %c0_i32_0 = arith.constant 0 : i32
    %c0_i32_1 = arith.constant 0 : i32
    return %c0_i32, %c0_i32_0 : i32, i32
  }
  func.func @transform_5(%arg0: i32) -> (i32, i32) {
    %c0_i32 = arith.constant 0 : i32
    %c0_i32_0 = arith.constant 0 : i32
    %c0_i32_1 = arith.constant 0 : i32
    return %c0_i32, %c0_i32_0 : i32, i32
  }
  func.func @transform_6(%arg0: i32) -> (i32, i32) {
    %c0_i32 = arith.constant 0 : i32
    %c0_i32_0 = arith.constant 0 : i32
    %c0_i32_1 = arith.constant 0 : i32
    return %c0_i32, %c0_i32_0 : i32, i32
  }
  func.func @transform_7(%arg0: i32) -> (i32, i32) {
    %c0_i32 = arith.constant 0 : i32
    %c0_i32_0 = arith.constant 0 : i32
    return %arg0, %c0_i32 : i32, i32
  }
}

</mosaic_0001>

<bundles_post_ra>
// kernel: tpu_custom_call.1
= control target key start
LH: loop header
LB: loop body
LE: loop exit
PB: predicated region body
PF: predicated region fallthrough
CT: control target
= control target key end

     0   :  { %12 = vsyncpa [#allocation3], 0  ;;  %s1778_s0 = inlined_call_operand.hbm [shape: f32[8,32], index: 0, kind: input, shape index: {}]   ;;  %s1779_s1 = inlined_call_operand.hbm [shape: bf16[32,1024], index: 1, kind: input, shape index: {}]   ;;  %s1780_s2 = inlined_call_operand.hbm [shape: f32[1,1024], index: 2, kind: input, shape index: {}]   ;;  %s1781_s3 = inlined_call_operand.hbm [shape: bf16[1024,128], index: 3, kind: input, shape index: {}]   ;;  %s1782_s4 = inlined_call_operand.vmem [shape: f32[1,128], index: 4, kind: input, shape index: {}]   ;;  %s1783_s5 = inlined_call_operand.hbm [shape: bf16[128,128], index: 5, kind: input, shape index: {}]   ;;  %s1784_s6 = inlined_call_operand.vmem [shape: f32[1,128], index: 6, kind: input, shape index: {}]   ;;  %s1785_s7 = inlined_call_operand.hbm [shape: f32[8,128], index: 7, kind: output, shape index: {}]  }
   0x1   :  { %13 = vsyncpa [#allocation6], 0 }
   0x2   :  { %14 = vsyncpa [#allocation9], 0  ;;  %s31_s26 = sshll.u32 %s1779_s1, 4  ;;  %s32_s26 = int_to_ptr.hbm [resolvable:$true] %s31_s26 }
   0x3   :  { %15 = vsyncpa [#allocation4], 0  ;;  %s1686_s27 = smov [#allocation5]   ;;  %s55_s8 = sshll.u32 %s1781_s3, 4  ;;  %s56_s8 = int_to_ptr.hbm [resolvable:$true] %s55_s8 }
   0x4   :  { %s33_s28 = sshll.u32 %s1686_s27, 4  ;;  %s1687_s9 = smov 512   ;;  %s34_s28 = int_to_ptr.vmem [resolvable:$true] %s33_s28 }
   0x5   :  { %s1688_s10 = smov 32   ;;  %s1689_s11 = smov [#allocation8]  }
   0x6   :  { %39 = dma.hbm_to_vmem [thread:$0]  %s32_s26, 2048, %s34_s28, [#allocation6], %s1687_s9, %s1687_s9, %s1688_s10  }
   0x7   :  { %s57_s12 = sshll.u32 %s1689_s11, 4  ;;  %s1690_s13 = smov 64   ;;  %s58_s12 = int_to_ptr.vmem [resolvable:$true] %s57_s12 }
   0x8   :  { %s1691_s14 = smov 4   ;;  %s21_s16 = sshll.u32 %s1778_s0, 4  ;;  %s22_s16 = int_to_ptr.hbm [resolvable:$true] %s21_s16 }
   0x9   :  { %63 = dma.hbm_to_vmem [thread:$0]  %s56_s8, 8192, %s58_s12, [#allocation9], %s1690_s13, %s1690_s13, %s1691_s14  }
   0xa   :  { %s1692_s17 = smov [#allocation2]   ;;  %s45_s20 = sshll.u32 %s1780_s2, 4  ;;  %s46_s20 = int_to_ptr.hbm [resolvable:$true] %s45_s20 }
   0xb   :  { %s23_s18 = sshll.u32 %s1692_s17, 4  ;;  %s1693_s21 = smov [#allocation7]   ;;  %s24_s18 = int_to_ptr.vmem [resolvable:$true] %s23_s18 }
   0xc   :  { %26 = dma.hbm_to_vmem [thread:$0]  %s22_s16, 128, %s24_s18, [#allocation3]  }
   0xd   :  { %s47_s22 = sshll.u32 %s1693_s21, 4  ;;  %s70_s25 = sshll.u32 %s1783_s5, 4  ;;  %s48_s22 = int_to_ptr.vmem [resolvable:$true] %s47_s22  ;;  %s71_s25 = int_to_ptr.hbm [resolvable:$true] %s70_s25 }
   0xe   :  { %50 = dma.hbm_to_vmem [thread:$0]  %s46_s20, 128, %s48_s22, [#allocation6]  }
   0xf   :  { %s1694_s0 = smov [#allocation10]  }
  0x10   :  { %s72_s26 = sshll.u32 %s1694_s0, 4  ;;  %s73_s26 = int_to_ptr.vmem [resolvable:$true] %s72_s26 }
  0x11   :  { %78 = dma.hbm_to_vmem [thread:$0]  %s71_s25, 1024, %s73_s26, [#allocation9], %s1690_s13, %s1690_s13, %s1691_s14  }
  0x12   :  { %1678 = dma.done.wait [#allocation3], 128  }
  0x13   :  { %1679 = vsyncadd [#allocation3], 4294967168 }
  0x14   :  { %1680 = dma.done.wait [#allocation6], 2176  }
  0x15   :  { %1681 = vsyncadd [#allocation6], 4294965120 }
  0x16   :  { %1682 = dma.done.wait [#allocation9], 9216  }
  0x17   :  { %1683 = vsyncadd [#allocation9], 4294958080  ;;  %v1436_v0 = vld [vmem:[#allocation5 + $0x44] sm:$0xf]  ;;  %v1102_v2 = vld [vmem:[#allocation5 + $0x48] sm:$0xf] }
  0x18   :  { %v1086_v1 = vld [vmem:[#allocation5 + $0x60] sm:$0xf0]  ;;  %v1457_v4 = vld [vmem:[#allocation5 + $0x64] sm:$0xf0]  ;;  %v1456_v5 = vld [vmem:[#allocation5 + $0x4c] sm:$0xf] }
  0x19   :  { %v1089_v3 = vor.u32 %v1436_v0, %v1086_v1  ;;  %v1104_v6 = vld [vmem:[#allocation5 + $0x68] sm:$0xf0]  ;;  %v1103_v7 = vor.u32 %v1457_v4, %v1102_v2  ;;  %v1084_v9 = vld [vmem:[#allocation5 + $0x40] sm:$0xf]  ;;  %v1434_v11 = vld [vmem:[#allocation5 + $0x4] sm:$0xf] }
  0x1a   :  { %v1107_v8 = vor.u32 %v1456_v5, %v1104_v6  ;;  %v1437_v10 = vld [vmem:[#allocation5 + $0x5c] sm:$0xf0]  ;;  %v1078_v13 = vld [vmem:[#allocation5 + $0x20] sm:$0xf0]  ;;  %v1094_v14 = vld [vmem:[#allocation5 + $0x8] sm:$0xf] }
  0x1b   :  { %157 = vmatpush.bf16.msra.mxu1 %v1089_v3  ;;  %v1085_v12 = vor.u32 %v1437_v10, %v1084_v9  ;;  %v1455_v15 = vld [vmem:[#allocation5 + $0x24] sm:$0xf0]  ;;  %236 = vmatpush.bf16.msra.mxu2 %v1103_v7  ;;  %v1081_v16 = vor.u32 %v1434_v11, %v1078_v13  ;;  %v1454_v18 = vld [vmem:[#allocation5 + $0xc] sm:$0xf]  ;;  %v1076_v20 = vld [vmem:[#allocation5] sm:$0xf] }
  0x1c   :  { %249 = vmatpush.bf16.msra.mxu3 %v1107_v8  ;;  %v1095_v17 = vor.u32 %v1455_v15, %v1094_v14  ;;  %v1096_v19 = vld [vmem:[#allocation5 + $0x28] sm:$0xf0]  ;;  %v1435_v22 = vld [vmem:[#allocation5 + $0x1c] sm:$0xf0]  ;;  %v102_v23 = vld [vmem:[#allocation2] sm:$0xff]  ;;  %vm134_vm0 = vcmask 261120  }
  0x1d   :  { %144 = vmatpush.bf16.msra.mxu0 %v1085_v12  ;;  %v1099_v21 = vor.u32 %v1454_v18, %v1096_v19  ;;  %v1453_v24 = vld [vmem:[#allocation8 + $0x78] sm:$0xff]  ;;  %v1077_v25 = vor.u32 %v1435_v22, %v1076_v20  ;;  %v1751_v26 = vpack.c.bf16 %v102_v23, %v102_v23  ;;  %v1452_v29 = vld [vmem:[#allocation8 + $0x70] sm:$0xff]  ;;  %v1451_v32 = vld [vmem:[#allocation8 + $0x68] sm:$0xff]  ;;  %s1695_s29 = smov [#allocation11]   ;;  %s1062_s10 = sshll.u32 %s1785_s7, 4  ;;  %s1063_s10 = int_to_ptr.hbm [resolvable:$true] %s1062_s10 }
  0x1e   :  { %v1445_v27 = vld [vmem:[#allocation8 + $0x38] sm:$0xff]  ;;  %v1444_v31 = vld [vmem:[#allocation8 + $0x30] sm:$0xff]  ;;  %v1443_v35 = vld [vmem:[#allocation8 + $0x28] sm:$0xff]  ;;  %s1060_s30 = sshll.u32 %s1695_s29, 4  ;;  %s1061_s30 = int_to_ptr.vmem [resolvable:$true] %s1060_s30 }
  0x1f   :  { %158 = vmatpush.bf16.msra.mxu1 %v1081_v16  ;;  %237 = vmatpush.bf16.msra.mxu2 %v1095_v17  ;;  %v1473_v28 = vld [vmem:[#allocation8 + $0xf8] sm:$0xff]  ;;  %v1472_v33 = vld [vmem:[#allocation8 + $0xf0] sm:$0xff]  ;;  %v1471_v36 = vld [vmem:[#allocation8 + $0xe8] sm:$0xff] }
  0x20   :  { %250 = vmatpush.bf16.msra.mxu3 %v1099_v21  ;;  %v1465_v30 = vld [vmem:[#allocation8 + $0xb8] sm:$0xff]  ;;  %v1464_v34 = vld [vmem:[#allocation8 + $0xb0] sm:$0xff]  ;;  %v1450_v37 = vld [vmem:[#allocation8 + $0x60] sm:$0xff] }
  0x21   :  { %145 = vmatpush.bf16.msra.mxu0 %v1077_v25  ;;  %v1463_v38 = vld [vmem:[#allocation8 + $0xa8] sm:$0xff]  ;;  %v1442_v39 = vld [vmem:[#allocation8 + $0x20] sm:$0xff]  ;;  %v1449_v41 = vld [vmem:[#allocation8 + $0x58] sm:$0xff] }
  0x22   :  { %1091 = vmatmul.msk.bf16.vlgmr.msra.gmra.mxu1 %vm134_vm0, %v1751_v26  ;;  %1108 = vmatmul.msk.bf16.vlgmr.msra.gmra.mxu2 %vm134_vm0, %v1751_v26  ;;  %v1470_v40 = vld [vmem:[#allocation8 + $0xe0] sm:$0xff]  ;;  %v1441_v43 = vld [vmem:[#allocation8 + $0x18] sm:$0xff]  ;;  %v1448_v45 = vld [vmem:[#allocation8 + $0x50] sm:$0xff] }
  0x23   :  { %510 = vmatpush.bf16.msrb.mxu2 %v1445_v27  ;;  %1109 = vmatmul.msk.bf16.vlgmr.msra.gmra.mxu3 %vm134_vm0, %v1751_v26  ;;  %v1462_v42 = vld [vmem:[#allocation8 + $0xa0] sm:$0xff]  ;;  %v1469_v44 = vld [vmem:[#allocation8 + $0xd8] sm:$0xff]  ;;  %v1440_v47 = vld [vmem:[#allocation8 + $0x10] sm:$0xff] }
  0x24   :  { %523 = vmatpush.bf16.msrb.mxu3 %v1453_v24  ;;  %1090 = vmatmul.msk.bf16.vlgmr.msra.gmra.mxu0 %vm134_vm0, %v1751_v26  ;;  %v1461_v46 = vld [vmem:[#allocation8 + $0x98] sm:$0xff]  ;;  %v1447_v48 = vld [vmem:[#allocation8 + $0x48] sm:$0xff]  ;;  %v1460_v49 = vld [vmem:[#allocation8 + $0x90] sm:$0xff] }
  0x25   :  { %401 = vmatpush.bf16.msrb.mxu1 %v1473_v28  ;;  %388 = vmatpush.bf16.msrb.mxu0 %v1465_v30  ;;  %v1468_v50 = vld [vmem:[#allocation8 + $0xd0] sm:$0xff]  ;;  %v1439_v51 = vld [vmem:[#allocation8 + $0x8] sm:$0xff]  ;;  %v1446_v52 = vld [vmem:[#allocation8 + $0x40] sm:$0xff] }
  0x26   :  { %v1459_v53 = vld [vmem:[#allocation8 + $0x88] sm:$0xff]  ;;  %v1438_v55 = vld [vmem:[#allocation8] sm:$0xff]  ;;  %v108_v6 = vld [vmem:[#allocation7] sm:$0x3] }
  0x27   :  { %511 = vmatpush.bf16.msrb.mxu2 %v1444_v31  ;;  %v1467_v54 = vld [vmem:[#allocation8 + $0xc8] sm:$0xff]  ;;  %v1458_v56 = vld [vmem:[#allocation8 + $0x80] sm:$0xff]  ;;  %v1330_v7 = vld [vmem:[#allocation5 + $0x58] sm:$0xf]  ;;  %v111_v9 = vperm.slane %v108_v6, 1  ;;  %v110_v12 = vperm.slane %v108_v6, 0 }
  0x28   :  { %524 = vmatpush.bf16.msrb.mxu3 %v1452_v29  ;;  %v1466_v57 = vld [vmem:[#allocation8 + $0xc0] sm:$0xff]  ;;  %v1476_v58 = vld [vmem:[#allocation5 + $0x54] sm:$0xf]  ;;  %v1248_v60 = vld [vmem:[#allocation5 + $0x50] sm:$0xf] }
  0x29   :  { %402 = vmatpush.bf16.msrb.mxu1 %v1472_v33  ;;  %389 = vmatpush.bf16.msrb.mxu0 %v1464_v34  ;;  %v1250_v59 = vld [vmem:[#allocation5 + $0x70] sm:$0xf0]  ;;  %v1477_v62 = vld [vmem:[#allocation5 + $0x6c] sm:$0xf0]  ;;  %v1497_v8 = vld [vmem:[#allocation5 + $0x74] sm:$0xf0] }
  0x2a   :  { %v1253_v61 = vor.u32 %v1476_v58, %v1250_v59  ;;  %v1240_v63 = vld [vmem:[#allocation5 + $0x10] sm:$0xf]  ;;  %v1249_v1 = vor.u32 %v1477_v62, %v1248_v60  ;;  %v1474_v2 = vld [vmem:[#allocation5 + $0x14] sm:$0xf]  ;;  %v1331_v10 = vor.u32 %v1497_v8, %v1330_v7  ;;  %v1322_v11 = vld [vmem:[#allocation5 + $0x18] sm:$0xf] }
  0x2b   :  { %512 = vmatpush.bf16.msrb.mxu2 %v1443_v35  ;;  %v1475_v0 = vld [vmem:[#allocation5 + $0x2c] sm:$0xf0]  ;;  %v1242_v3 = vld [vmem:[#allocation5 + $0x30] sm:$0xf0]  ;;  %v1495_v13 = vld [vmem:[#allocation5 + $0x34] sm:$0xf0] }
  0x2c   :  { %525 = vmatpush.bf16.msrb.mxu3 %v1451_v32  ;;  %v1245_v4 = vor.u32 %v1474_v2, %v1242_v3  ;;  %v1241_v5 = vor.u32 %v1475_v0, %v1240_v63  ;;  %v1323_v15 = vor.u32 %v1495_v13, %v1322_v11  ;;  %v204_v17 = vld [vmem:[#allocation7 + $0x2] sm:$0x3]  ;;  %v1496_v32 = vld [vmem:[#allocation5 + $0x5c] sm:$0xf]  ;;  %v1502_v60 = vld [vmem:[#allocation8 + $0x1a0] sm:$0xff] }
  0x2d   :  { %403 = vmatpush.bf16.msrb.mxu1 %v1471_v36  ;;  %390 = vmatpush.bf16.msrb.mxu0 %v1463_v38  ;;  %v206_v21 = vperm.slane %v204_v17, 0  ;;  %v207_v22 = vperm.slane %v204_v17, 1  ;;  %v1332_v33 = vld [vmem:[#allocation5 + $0x78] sm:$0xf0]  ;;  %v1513_v58 = vld [vmem:[#allocation8 + $0x1f8] sm:$0xff]  ;;  %v1479_v62 = vld [vmem:[#allocation8 + $0x108] sm:$0xff] }
  0x2e   :  { %v1480_v59 = vld [vmem:[#allocation8 + $0x110] sm:$0xff]  ;;  %v1487_v63 = vld [vmem:[#allocation8 + $0x148] sm:$0xff]  ;;  %v1501_v0 = vld [vmem:[#allocation8 + $0x198] sm:$0xff] }
  0x2f   :  { %513 = vmatpush.bf16.msrb.mxu2 %v1442_v39  ;;  %v1478_v2 = vld [vmem:[#allocation8 + $0x100] sm:$0xff]  ;;  %v1499_v6 = vld [vmem:[#allocation8 + $0x188] sm:$0xff]  ;;  %v1509_v7 = vld [vmem:[#allocation8 + $0x1d8] sm:$0xff] }
  0x30   :  { %526 = vmatpush.bf16.msrb.mxu3 %v1450_v37  ;;  %v1335_v37 = vor.u32 %v1496_v32, %v1332_v33  ;;  %v1486_v3 = vld [vmem:[#allocation8 + $0x140] sm:$0xff] }
  0x31   :  { %404 = vmatpush.bf16.msrb.mxu1 %v1470_v40  ;;  %391 = vmatpush.bf16.msrb.mxu0 %v1462_v42  ;;  %v1494_v40 = vld [vmem:[#allocation5 + $0x1c] sm:$0xf]  ;;  %v1485_v42 = vld [vmem:[#allocation8 + $0x138] sm:$0xff]  ;;  %v1498_v8 = vld [vmem:[#allocation8 + $0x180] sm:$0xff] }
  0x33   :  { %514 = vmatpush.bf16.msrb.mxu2 %v1441_v43  ;;  %v1493_v43 = vld [vmem:[#allocation8 + $0x178] sm:$0xff] }
  0x34   :  { %527 = vmatpush.bf16.msrb.mxu3 %v1449_v41  ;;  %v1324_v41 = vld [vmem:[#allocation5 + $0x38] sm:$0xf0] }
  0x35   :  { %405 = vmatpush.bf16.msrb.mxu1 %v1469_v44  ;;  %392 = vmatpush.bf16.msrb.mxu0 %v1461_v46  ;;  %v1327_v46 = vor.u32 %v1494_v40, %v1324_v41 }
  0x37   :  { %515 = vmatpush.bf16.msrb.mxu2 %v1440_v47  ;;  %v1484_v47 = vld [vmem:[#allocation8 + $0x130] sm:$0xff] }
  0x38   :  { %528 = vmatpush.bf16.msrb.mxu3 %v1448_v45 }
  0x39   :  { %393 = vmatpush.bf16.msrb.mxu0 %v1460_v49  ;;  %406 = vmatpush.bf16.msrb.mxu1 %v1468_v50  ;;  %v1483_v49 = vld [vmem:[#allocation8 + $0x128] sm:$0xff] }
  0x3a   :  { %v1491_v50 = vld [vmem:[#allocation8 + $0x168] sm:$0xff] }
  0x3b   :  { %516 = vmatpush.bf16.msrb.mxu2 %v1439_v51  ;;  %v1505_v51 = vld [vmem:[#allocation8 + $0x1b8] sm:$0xff] }
  0x3c   :  { %529 = vmatpush.bf16.msrb.mxu3 %v1447_v48  ;;  %v1492_v48 = vld [vmem:[#allocation8 + $0x170] sm:$0xff] }
  0x3d   :  { %394 = vmatpush.bf16.msrb.mxu0 %v1459_v53  ;;  %407 = vmatpush.bf16.msrb.mxu1 %v1467_v54  ;;  %v1490_v53 = vld [vmem:[#allocation8 + $0x160] sm:$0xff]  ;;  %v1504_v54 = vld [vmem:[#allocation8 + $0x1b0] sm:$0xff] }
  0x3f   :  { %517 = vmatpush.bf16.msrb.mxu2 %v1438_v55  ;;  %v1481_v55 = vld [vmem:[#allocation8 + $0x118] sm:$0xff] }
  0x40   :  { %530 = vmatpush.bf16.msrb.mxu3 %v1446_v52  ;;  %v1482_v52 = vld [vmem:[#allocation8 + $0x120] sm:$0xff] }
  0x41   :  { %395 = vmatpush.bf16.msrb.mxu0 %v1458_v56  ;;  %408 = vmatpush.bf16.msrb.mxu1 %v1466_v57  ;;  %v1489_v56 = vld [vmem:[#allocation8 + $0x158] sm:$0xff]  ;;  %v1503_v57 = vld [vmem:[#allocation8 + $0x1a8] sm:$0xff] }
  0x43   :  { %724 = vmatpush.bf16.msra.mxu2 %v1485_v42 }
  0x44   :  { %572 = vmatpush.bf16.msra.mxu3 %v1249_v1  ;;  %v1511_v1 = vld [vmem:[#allocation8 + $0x1e8] sm:$0xff] }
  0x45   :  { %585 = vmatpush.bf16.msra.mxu1 %v1253_v61  ;;  %787 = vmatpush.bf16.msra.mxu0 %v1331_v10  ;;  %v1512_v61 = vld [vmem:[#allocation8 + $0x1f0] sm:$0xff]  ;;  %v1507_v10 = vld [vmem:[#allocation8 + $0x1c8] sm:$0xff] }
  0x47   :  { %725 = vmatpush.bf16.msra.mxu2 %v1484_v47 }
  0x48   :  { %573 = vmatpush.bf16.msra.mxu3 %v1241_v5  ;;  %v1510_v5 = vld [vmem:[#allocation8 + $0x1e0] sm:$0xff] }
  0x49   :  { %586 = vmatpush.bf16.msra.mxu1 %v1245_v4  ;;  %788 = vmatpush.bf16.msra.mxu0 %v1323_v15  ;;  %v1500_v4 = vld [vmem:[#allocation8 + $0x190] sm:$0xff] }
  0x4b   :  { %726 = vmatpush.bf16.msra.mxu2 %v1483_v49 }
  0x4f   :  { %727 = vmatpush.bf16.msra.mxu2 %v1482_v52 }
  0x53   :  { %728 = vmatpush.bf16.msra.mxu2 %v1481_v55  ;;  %v1516_v55 = vld [vmem:[#allocation10 + $0x10] sm:$0xff] }
  0x57   :  { %729 = vmatpush.bf16.msra.mxu2 %v1480_v59 }
  0x5b   :  { %730 = vmatpush.bf16.msra.mxu2 %v1479_v62 }
  0x5f   :  { %731 = vmatpush.bf16.msra.mxu2 %v1478_v2 }
  0x9f   :  { %v160_v14 = vpop.f32.mrf.mxu1 }
  0xa0   :  { %v161_v16 = vadd.f32 %v160_v14, %v111_v9  ;;  %v1508_v9 = vld [vmem:[#allocation8 + $0x1d0] sm:$0xff] }
  0xa1   :  { %v147_v18 = vpop.f32.mrf.mxu0 }
  0xa2   :  { %v165_v19 = vmax.f32 %v161_v16, 0.0  ;;  %v148_v20 = vadd.f32 %v147_v18, %v110_v12  ;;  %v1506_v16 = vld [vmem:[#allocation8 + $0x1c0] sm:$0xff] }
  0xa4   :  { %v167_v23 = vpack.c.bf16 %v165_v19, %v165_v19  ;;  %v164_v24 = vmax.f32 %v148_v20, 0.0 }
  0xa5   :  { %v239_v27 = vpop.f32.mrf.mxu2 }
  0xa6   :  { %v166_v25 = vpack.c.bf16 %v164_v24, %v164_v24  ;;  %v252_v28 = vpop.f32.mrf.mxu3  ;;  %531 = vmatmul.bf16.vlgmr.msrb.gmra.mxu3 %v167_v23  ;;  %v240_v29 = vadd.f32 %v239_v27, %v206_v21  ;;  %v540_v23 = vld [vmem:[#allocation7 + $0x4] sm:$0x3]  ;;  %v1520_v27 = vld [vmem:[#allocation10 + $0x30] sm:$0xff] }
  0xa7   :  { %v253_v30 = vadd.f32 %v252_v28, %v207_v22  ;;  %v162_v31 = vpop.f32.mrf.mxu1  ;;  %737 = vmatpush.bf16.msrb.mxu3 %v1493_v43  ;;  %v1521_v22 = vld [vmem:[#allocation10 + $0x38] sm:$0xff]  ;;  %v542_v28 = vperm.slane %v540_v23, 0 }
  0xa8   :  { %518 = vmatmul.bf16.vlgmr.msrb.gmra.mxu2 %v166_v25  ;;  %v256_v34 = vmax.f32 %v240_v29, 0.0  ;;  %v755_v25 = vld [vmem:[#allocation7 + $0x6] sm:$0x3]  ;;  %v543_v29 = vperm.slane %v540_v23, 1  ;;  %v1519_v31 = vld [vmem:[#allocation10 + $0x28] sm:$0xff] }
  0xa9   :  { %v257_v35 = vmax.f32 %v253_v30, 0.0  ;;  %v149_v36 = vpop.f32.mrf.mxu0  ;;  %1041 = vmatpush.bf16.msrb.mxu2 %v1521_v22  ;;  %v757_v30 = vperm.slane %v755_v25, 0  ;;  %v758_v47 = vperm.slane %v755_v25, 1 }
  0xaa   :  { %v258_v38 = vpack.c.bf16 %v256_v34, %v256_v34 }
  0xab   :  { %v259_v39 = vpack.c.bf16 %v257_v35, %v257_v35  ;;  %738 = vmatpush.bf16.msrb.mxu3 %v1492_v48 }
  0xac   :  { %396 = vmatmul.bf16.vlgmr.msrb.gmra.mxu0 %v258_v38 }
  0xad   :  { %409 = vmatmul.bf16.vlgmr.msrb.gmra.mxu1 %v259_v39  ;;  %v241_v45 = vpop.f32.mrf.mxu2  ;;  %939 = vmatpush.bf16.msrb.mxu0 %v1505_v51 }
  0xae   :  { %v254_v44 = vpop.f32.mrf.mxu3  ;;  %800 = vmatpush.bf16.msrb.mxu1 %v1335_v37  ;;  %1042 = vmatpush.bf16.msrb.mxu2 %v1520_v27 }
  0xaf   :  { %739 = vmatpush.bf16.msrb.mxu3 %v1491_v50 }
  0xb1   :  { %940 = vmatpush.bf16.msrb.mxu0 %v1504_v54  ;;  %v1517_v54 = vld [vmem:[#allocation10 + $0x18] sm:$0xff] }
  0xb2   :  { %801 = vmatpush.bf16.msrb.mxu1 %v1327_v46  ;;  %1043 = vmatpush.bf16.msrb.mxu2 %v1519_v31 }
  0xb3   :  { %740 = vmatpush.bf16.msrb.mxu3 %v1490_v53  ;;  %v1518_v53 = vld [vmem:[#allocation10 + $0x20] sm:$0xff] }
  0xb5   :  { %941 = vmatpush.bf16.msrb.mxu0 %v1503_v57  ;;  %v1514_v57 = vld [vmem:[#allocation10] sm:$0xff] }
  0xb6   :  { %1254 = vmatmul.msk.bf16.vlgmr.msra.gmra.mxu3 %vm134_vm0, %v1751_v26  ;;  %1044 = vmatpush.bf16.msrb.mxu2 %v1518_v53 }
  0xb7   :  { %741 = vmatpush.bf16.msrb.mxu3 %v1489_v56  ;;  %v1515_v56 = vld [vmem:[#allocation10 + $0x8] sm:$0xff] }
  0xb9   :  { %942 = vmatpush.bf16.msrb.mxu0 %v1502_v60 }
  0xba   :  { %1045 = vmatpush.bf16.msrb.mxu2 %v1517_v54 }
  0xbc   :  { %1336 = vmatmul.msk.bf16.vlgmr.msra.gmra.mxu0 %vm134_vm0, %v1751_v26 }
  0xbd   :  { %1255 = vmatmul.msk.bf16.vlgmr.msra.gmra.mxu1 %vm134_vm0, %v1751_v26  ;;  %943 = vmatpush.bf16.msrb.mxu0 %v1501_v0 }
  0xbe   :  { %952 = vmatpush.bf16.msra.mxu1 %v1513_v58  ;;  %1046 = vmatpush.bf16.msrb.mxu2 %v1516_v55 }
  0xc1   :  { %944 = vmatpush.bf16.msrb.mxu0 %v1500_v4 }
  0xc2   :  { %953 = vmatpush.bf16.msra.mxu1 %v1512_v61  ;;  %1047 = vmatpush.bf16.msrb.mxu2 %v1515_v56 }
  0xc5   :  { %945 = vmatpush.bf16.msrb.mxu0 %v1499_v6 }
  0xc6   :  { %954 = vmatpush.bf16.msra.mxu1 %v1511_v1  ;;  %1048 = vmatpush.bf16.msrb.mxu2 %v1514_v57 }
  0xc9   :  { %946 = vmatpush.bf16.msrb.mxu0 %v1498_v8 }
  0xca   :  { %955 = vmatpush.bf16.msra.mxu1 %v1510_v5 }
  0xcd   :  { %1337 = vmatmul.msk.bf16.vlgmr.msrb.gmra.mxu1 %vm134_vm0, %v1751_v26  ;;  %v1488_v26 = vld [vmem:[#allocation8 + $0x150] sm:$0xff] }
  0xce   :  { %742 = vmatpush.bf16.msrb.mxu3 %v1488_v26  ;;  %956 = vmatpush.bf16.msra.mxu1 %v1509_v7 }
  0xd2   :  { %743 = vmatpush.bf16.msrb.mxu3 %v1487_v63  ;;  %957 = vmatpush.bf16.msra.mxu1 %v1508_v9  ;;  %v1533_v9 = vld [vmem:[%s1784_s6] ss:$0 sm:$0xff] }
  0xd6   :  { %744 = vmatpush.bf16.msrb.mxu3 %v1486_v3  ;;  %958 = vmatpush.bf16.msra.mxu1 %v1507_v10  ;;  %v1532_v3 = vld [vmem:[%s1782_s4] ss:$0 sm:$0xff] }
  0xda   :  { %959 = vmatpush.bf16.msra.mxu1 %v1506_v16 }
 0x129   :  { %v532_v11 = vpop.f32.mrf.mxu3  ;;  %v397_v12 = vpop.f32.mrf.mxu0 }
 0x12a   :  { %v410_v13 = vpop.f32.mrf.mxu1 }
 0x12b   :  { %v411_v14 = vadd.f32 %v410_v13, %v397_v12  ;;  %v519_v15 = vpop.f32.mrf.mxu2 }
 0x12d   :  { %v520_v17 = vadd.f32 %v519_v15, %v411_v14 }
 0x12f   :  { %v533_v18 = vadd.f32 %v532_v11, %v520_v17 }
 0x131   :  { %v534_v19 = vpop.f32.mrf.mxu3  ;;  %v399_v21 = vpop.f32.mrf.mxu0 }
 0x132   :  { %v412_v20 = vpop.f32.mrf.mxu1 }
 0x133   :  { %v521_v24 = vpop.f32.mrf.mxu2 }
 0x139   :  { %v575_v32 = vpop.f32.mrf.mxu3  ;;  %v790_v35 = vpop.f32.mrf.mxu0 }
 0x13a   :  { %v576_v33 = vadd.f32 %v575_v32, %v542_v28  ;;  %v588_v34 = vpop.f32.mrf.mxu1  ;;  %v791_v37 = vadd.f32 %v790_v35, %v757_v30 }
 0x13b   :  { %v589_v36 = vadd.f32 %v588_v34, %v543_v29 }
 0x13c   :  { %v592_v38 = vmax.f32 %v576_v33, 0.0  ;;  %v807_v40 = vmax.f32 %v791_v37, 0.0 }
 0x13d   :  { %v593_v39 = vmax.f32 %v589_v36, 0.0 }
 0x13e   :  { %v594_v41 = vpack.c.bf16 %v592_v38, %v592_v38  ;;  %v809_v43 = vpack.c.bf16 %v807_v40, %v807_v40 }
 0x13f   :  { %v595_v42 = vpack.c.bf16 %v593_v39, %v593_v39 }
 0x140   :  { %732 = vmatmul.bf16.vlgmr.msra.gmra.mxu2 %v594_v41  ;;  %947 = vmatmul.bf16.vlgmr.msrb.gmra.mxu0 %v809_v43 }
 0x141   :  { %745 = vmatmul.bf16.vlgmr.msrb.gmra.mxu3 %v595_v42  ;;  %v577_v44 = vpop.f32.mrf.mxu3  ;;  %v792_v46 = vpop.f32.mrf.mxu0 }
 0x142   :  { %v590_v45 = vpop.f32.mrf.mxu1 }
 0x14a   :  { %v803_v48 = vpop.f32.mrf.mxu1 }
 0x14b   :  { %v804_v49 = vadd.f32 %v803_v48, %v758_v47 }
 0x14d   :  { %v808_v50 = vmax.f32 %v804_v49, 0.0 }
 0x14f   :  { %v810_v51 = vpack.c.bf16 %v808_v50, %v808_v50 }
 0x151   :  { %960 = vmatmul.bf16.vlgmr.msra.gmra.mxu1 %v810_v51 }
 0x152   :  { %v805_v52 = vpop.f32.mrf.mxu1 }
 0x1bd   :  { %v948_v58 = vpop.f32.mrf.mxu0 }
 0x1c3   :  { %v733_v59 = vpop.f32.mrf.mxu2 }
 0x1c4   :  { %v746_v26 = vpop.f32.mrf.mxu3 }
 0x1c5   :  { %v950_v60 = vpop.f32.mrf.mxu0  ;;  %v747_v61 = vadd.f32 %v746_v26, %v733_v59 }
 0x1c7   :  { %v750_v1 = vadd.f32 %v747_v61, %v533_v18 }
 0x1cb   :  { %v735_v62 = vpop.f32.mrf.mxu2 }
 0x1cc   :  { %v748_v63 = vpop.f32.mrf.mxu3 }
 0x1ce   :  { %v961_v0 = vpop.f32.mrf.mxu1 }
 0x1cf   :  { %v962_v2 = vadd.f32 %v961_v0, %v948_v58 }
 0x1d1   :  { %v965_v4 = vadd.f32 %v962_v2, %v750_v1 }
 0x1d3   :  { %v970_v5 = vadd.f32 %v1532_v3, %v965_v4 }
 0x1d5   :  { %v971_v6 = vmax.f32 %v970_v5, 0.0 }
 0x1d6   :  { %v963_v7 = vpop.f32.mrf.mxu1 }
 0x1d7   :  { %v972_v8 = vpack.c.bf16 %v971_v6, %v971_v6 }
 0x1d9   :  { %1049 = vmatmul.bf16.vlgmr.msrb.gmra.mxu2 %v972_v8 }
 0x25c   :  { %v1050_v10 = vpop.f32.mrf.mxu2 }
 0x25d   :  { %v1051_v11 = vadd.f32 %v1533_v9, %v1050_v10 }
 0x25f   :  { %1054 = vst [vmem:[#allocation11] sm:$0xff] %v1051_v11 }
 0x260   :  { %1065 = dma.vmem_to_hbm [thread:$0]  %s1061_s30, 128, %s1063_s10, [#allocation4]  }
 0x264   :  { %v1052_v12 = vpop.f32.mrf.mxu2 }
 0x265   :  { %1684 = dma.done.wait [#allocation4], 128  }
 0x266   :  { %1685 = vsyncadd [#allocation4], 4294967168 }
 0x267   :  { %1070 = vsyncpa [#allocation3], 1 }
 0x268   :  { %1071 = vsyncpa [#allocation6], 1 }
 0x269   :  { %1072 = vsyncpa [#allocation9], 1 }
 0x26a   :  { %1073 = vsyncpa [#allocation4], 1 }

</bundles_post_ra>
